<compile_context>
chip_gen: v6e
topology: v6e:2x2x1
jax: 0.10.0
libtpu: 0.0.40
codegen_flags: <defaults>
</compile_context>

<pallas_src>
import jax
import jax.numpy as jnp
from jax.experimental import pallas as pl
from jax.experimental.pallas import tpu as pltpu

INPUT_DIM = 1000
H1, H2, OUT = 128, 64, 2


def _round_up(n, m):
    return ((n + m - 1) // m) * m


def _tile_config():
    """Returns (tb_max, min_grid_steps, l1_bf16) for the local TPU generation."""
    kind = ""
    try:
        kind = jax.devices()[0].device_kind.lower()
    except Exception:
        pass
    if "v5 lite" in kind or "v5lite" in kind or "v5e" in kind:
        # v5e: 16 MiB scoped-VMEM default; f32 MXU ~4x slower -> bf16 layer-1 compute.
        return 1024, 1, True
    if "v6" in kind or "v5" in kind:        # v6e / v5p: 1 TC, big VMEM
        return 2048, 1, False
    if "7" in kind:                         # v7x: 2 TCs per chip, 64 MiB VMEM per TC
        return 2048, 2, False
    return 1024, 2, False                   # unknown: conservative


def _make_mlp_kernel(l1_bf16):
    def kernel(x_ref, w1_ref, b1_ref, w2_ref, b2_ref, w3_ref, b3_ref, o_ref):
        x = x_ref[...]
        w1 = w1_ref[...]
        if l1_bf16:
            # v5e: keep the HBM stream f32 but feed the MXU bf16 operands;
            # accumulation, bias-add and ReLU stay f32.
            x = x.astype(jnp.bfloat16)
            w1 = w1.astype(jnp.bfloat16)

        # Layer 1: Linear(1000 -> 128) + ReLU (Dropout is identity at inference).
        h1 = jnp.dot(x, w1, preferred_element_type=jnp.float32)
        h1 = jnp.maximum(h1 + b1_ref[...], 0.0)

        # Layer 2: Linear(128 -> 64) + ReLU.
        h2 = jnp.dot(h1, w2_ref[...], preferred_element_type=jnp.float32)
        h2 = jnp.maximum(h2 + b2_ref[...], 0.0)

        # Layer 3: Linear(64 -> 2).
        out = jnp.dot(h2, w3_ref[...], preferred_element_type=jnp.float32)
        o_ref[...] = (out + b3_ref[...]).astype(o_ref.dtype)

    return kernel


def spam_classifier_forward(x, params, *, l1_bf16=None):
    """Fused MLP forward.

    x: (B, D) float32 (streamed from HBM as-is; no wrapper-side copies).
    params: w1 (D,128), b1 (1,128), w2 (128,64), b2 (1,64), w3 (64,2), b3 (1,2).
    l1_bf16: None -> per-generation policy; True/False forces the layer-1
             in-kernel bf16 compute path (f32 accumulation either way).
    """
    B, D = x.shape
    w1, b1 = params["w1"], params["b1"]
    w2, b2 = params["w2"], params["b2"]
    w3, b3 = params["w3"], params["b3"]
    assert w1.shape[0] == D, (w1.shape, D)

    tb_max, min_steps, l1_bf16_auto = _tile_config()
    if l1_bf16 is None:
        l1_bf16 = l1_bf16_auto

    # Balanced batch tiles; ragged tail handled as a partial block (no batch pad).
    max_steps = max(1, pl.cdiv(B, 8))                       # tiles >= 8 rows
    steps = min(max(min_steps, pl.cdiv(B, tb_max)), max_steps)
    tb = _round_up(pl.cdiv(B, steps), 8)
    if tb > B:
        tb = B                                              # single block == full batch dim
    grid = (pl.cdiv(B, tb),)

    flops = 2 * B * (D * H1 + H1 * H2 + H2 * OUT)
    bytes_accessed = (
        x.size * x.dtype.itemsize
        + (w1.size + w2.size + w3.size + b1.size + b2.size + b3.size) * 4
        + B * OUT * 4)

    out = pl.pallas_call(
        _make_mlp_kernel(l1_bf16),
        out_shape=jax.ShapeDtypeStruct((B, OUT), jnp.float32),
        grid_spec=pltpu.PrefetchScalarGridSpec(
            num_scalar_prefetch=0,
            grid=grid,
            in_specs=[
                pl.BlockSpec((tb, D), lambda i: (i, 0)),     # x: batch-tiled HBM stream
                pl.BlockSpec((D, H1), lambda i: (0, 0)),     # w1: VMEM-resident
                pl.BlockSpec((1, H1), lambda i: (0, 0)),     # b1
                pl.BlockSpec((H1, H2), lambda i: (0, 0)),    # w2
                pl.BlockSpec((1, H2), lambda i: (0, 0)),     # b2
                pl.BlockSpec((H2, OUT), lambda i: (0, 0)),   # w3
                pl.BlockSpec((1, OUT), lambda i: (0, 0)),    # b3
            ],
            out_specs=pl.BlockSpec((tb, OUT), lambda i: (i, 0)),
        ),
        compiler_params=pltpu.CompilerParams(
            dimension_semantics=("parallel",),   # shard batch grid across TCs on v7x
            vmem_limit_bytes=40 << 20),          # headroom for tb=2048 f32 double-buffer
        cost_estimate=pl.CostEstimate(
            flops=flops, transcendentals=0, bytes_accessed=bytes_accessed),
    )(x, w1, b1, w2, b2, w3, b3)

    return out


def init_params(key, input_dim=INPUT_DIM):
    """PyTorch nn.Linear default init: U[-1/sqrt(fan_in), +1/sqrt(fan_in)]."""
    dims = [(input_dim, H1), (H1, H2), (H2, OUT)]
    params = {}
    for i, (fan_in, fan_out) in enumerate(dims, start=1):
        key, kw, kb = jax.random.split(key, 3)
        bound = 1.0 / jnp.sqrt(fan_in)
        params[f"w{i}"] = jax.random.uniform(
            kw, (fan_in, fan_out), jnp.float32, -bound, bound)
        # Biases kept 2D (1, out) so they broadcast cleanly in the kernel.
        params[f"b{i}"] = jax.random.uniform(
            kb, (1, fan_out), jnp.float32, -bound, bound)
    return params


def reference_forward(x, params):
    hp = jax.lax.Precision.HIGHEST
    h1 = jnp.maximum(jnp.dot(x, params["w1"], precision=hp) + params["b1"], 0.0)
    h2 = jnp.maximum(jnp.dot(h1, params["w2"], precision=hp) + params["b2"], 0.0)
    return jnp.dot(h2, params["w3"], precision=hp) + params["b3"]


if __name__ == "__main__":
    key = jax.random.PRNGKey(0)
    key, kx = jax.random.split(key)

    B = 8
    x = jax.random.normal(kx, (B, INPUT_DIM), dtype=jnp.float32)
    params = init_params(key, input_dim=INPUT_DIM)

    ref = reference_forward(x, params)

    # Default path: per-generation tile size / layer-1 dtype policy.
    out = jax.block_until_ready(spam_classifier_forward(x, params))
    assert out.shape == (B, OUT), out.shape
    assert jnp.allclose(out, ref, atol=5e-2, rtol=5e-2), "default path mismatch vs reference"

    # Forced full-f32 path: tight tolerance vs pure-JAX reference.
    out_f32 = jax.block_until_ready(spam_classifier_forward(x, params, l1_bf16=False))
    assert out_f32.shape == (B, OUT), out_f32.shape
    assert jnp.allclose(out_f32, ref, atol=1e-3, rtol=1e-3), "f32 path mismatch vs reference"

    # Forced v5e-style bf16 layer-1 compute (f32 HBM stream, f32 accumulation).
    out_bf16 = jax.block_until_ready(spam_classifier_forward(x, params, l1_bf16=True))
    assert out_bf16.shape == (B, OUT), out_bf16.shape
    assert jnp.allclose(out_bf16, ref, atol=5e-2, rtol=5e-2), "bf16-L1 path mismatch vs reference"

    print("KERNEL_OK")
</pallas_src>

<mosaic_0001>
module attributes {stable_mosaic.version = 11 : i64} {
  func.func @kernel(%arg0: i32, %arg1: memref<8x1000xf32, #tpu.memory_space<vmem>>, %arg2: memref<1000x128xf32, #tpu.memory_space<vmem>>, %arg3: memref<1x128xf32, #tpu.memory_space<vmem>>, %arg4: memref<128x64xf32, #tpu.memory_space<vmem>>, %arg5: memref<1x64xf32, #tpu.memory_space<vmem>>, %arg6: memref<64x2xf32, #tpu.memory_space<vmem>>, %arg7: memref<1x2xf32, #tpu.memory_space<vmem>>, %arg8: memref<8x2xf32, #tpu.memory_space<vmem>>) attributes {dimension_semantics = [#tpu.dimension_semantics<parallel>], iteration_bounds = array<i64: 1>, scalar_prefetch = 0 : i64, scratch_operands = 0 : i64, tpu.core_type = #tpu.core_type<tc>, window_params = [{transform_indices = @transform_0, window_bounds = array<i64: 8, 1000>}, {pipeline_mode = #tpu.pipeline_mode<synchronous>, transform_indices = @transform_1, window_bounds = array<i64: 1000, 128>}, {pipeline_mode = #tpu.pipeline_mode<synchronous>, transform_indices = @transform_2, window_bounds = array<i64: 1, 128>}, {pipeline_mode = #tpu.pipeline_mode<synchronous>, transform_indices = @transform_3, window_bounds = array<i64: 128, 64>}, {pipeline_mode = #tpu.pipeline_mode<synchronous>, transform_indices = @transform_4, window_bounds = array<i64: 1, 64>}, {pipeline_mode = #tpu.pipeline_mode<synchronous>, transform_indices = @transform_5, window_bounds = array<i64: 64, 2>}, {pipeline_mode = #tpu.pipeline_mode<synchronous>, transform_indices = @transform_6, window_bounds = array<i64: 1, 2>}, {transform_indices = @transform_7, window_bounds = array<i64: 8, 2>}]} {
    %c0 = arith.constant 0 : index
    %c0_0 = arith.constant 0 : index
    %0 = vector.load %arg1[%c0, %c0_0] : memref<8x1000xf32, #tpu.memory_space<vmem>>, vector<8x1000xf32>
    %c0_1 = arith.constant 0 : index
    %c0_2 = arith.constant 0 : index
    %1 = vector.load %arg2[%c0_1, %c0_2] : memref<1000x128xf32, #tpu.memory_space<vmem>>, vector<1000x128xf32>
    %cst = arith.constant dense<0.000000e+00> : vector<8x128xf32>
    %2 = tpu.matmul %0, %1, %cst {dimension_numbers = #tpu.dot_dimension_numbers<[1], [0], [0], [1], [0, 0, 1, 1], [], []>} : vector<8x1000xf32>, vector<1000x128xf32>, vector<8x128xf32> -> vector<8x128xf32>
    %c0_3 = arith.constant 0 : index
    %c0_4 = arith.constant 0 : index
    %3 = vector.load %arg3[%c0_3, %c0_4] : memref<1x128xf32, #tpu.memory_space<vmem>>, vector<1x128xf32>
    %4 = vector.broadcast %3 : vector<1x128xf32> to vector<8x128xf32>
    %5 = arith.addf %2, %4 : vector<8x128xf32>
    %cst_5 = arith.constant 0.000000e+00 : f32
    %6 = vector.broadcast %cst_5 : f32 to vector<8x128xf32>
    %7 = arith.maximumf %5, %6 : vector<8x128xf32>
    %c0_6 = arith.constant 0 : index
    %c0_7 = arith.constant 0 : index
    %8 = vector.load %arg4[%c0_6, %c0_7] : memref<128x64xf32, #tpu.memory_space<vmem>>, vector<128x64xf32>
    %cst_8 = arith.constant dense<0.000000e+00> : vector<8x64xf32>
    %9 = tpu.matmul %7, %8, %cst_8 {dimension_numbers = #tpu.dot_dimension_numbers<[1], [0], [0], [1], [0, 0, 1, 1], [], []>} : vector<8x128xf32>, vector<128x64xf32>, vector<8x64xf32> -> vector<8x64xf32>
    %c0_9 = arith.constant 0 : index
    %c0_10 = arith.constant 0 : index
    %10 = vector.load %arg5[%c0_9, %c0_10] : memref<1x64xf32, #tpu.memory_space<vmem>>, vector<1x64xf32>
    %11 = vector.broadcast %10 : vector<1x64xf32> to vector<8x64xf32>
    %12 = arith.addf %9, %11 : vector<8x64xf32>
    %cst_11 = arith.constant 0.000000e+00 : f32
    %13 = vector.broadcast %cst_11 : f32 to vector<8x64xf32>
    %14 = arith.maximumf %12, %13 : vector<8x64xf32>
    %c0_12 = arith.constant 0 : index
    %c0_13 = arith.constant 0 : index
    %15 = vector.load %arg6[%c0_12, %c0_13] : memref<64x2xf32, #tpu.memory_space<vmem>>, vector<64x2xf32>
    %cst_14 = arith.constant dense<0.000000e+00> : vector<8x2xf32>
    %16 = tpu.matmul %14, %15, %cst_14 {dimension_numbers = #tpu.dot_dimension_numbers<[1], [0], [0], [1], [0, 0, 1, 1], [], []>} : vector<8x64xf32>, vector<64x2xf32>, vector<8x2xf32> -> vector<8x2xf32>
    %c0_15 = arith.constant 0 : index
    %c0_16 = arith.constant 0 : index
    %17 = vector.load %arg7[%c0_15, %c0_16] : memref<1x2xf32, #tpu.memory_space<vmem>>, vector<1x2xf32>
    %18 = vector.broadcast %17 : vector<1x2xf32> to vector<8x2xf32>
    %19 = arith.addf %16, %18 : vector<8x2xf32>
    %c0_17 = arith.constant 0 : index
    %c0_18 = arith.constant 0 : index
    %20 = vector.load %arg8[%c0_17, %c0_18] : memref<8x2xf32, #tpu.memory_space<vmem>>, vector<8x2xf32>
    tpu.vector_store %arg8[%c0_17, %c0_18], %19 {strides = array<i32>} : memref<8x2xf32, #tpu.memory_space<vmem>>, vector<8x2xf32>,
    return
  }
  func.func @transform_0(%arg0: i32) -> (i32, i32) {
    %c0_i32 = arith.constant 0 : i32
    %c0_i32_0 = arith.constant 0 : i32
    return %arg0, %c0_i32 : i32, i32
  }
  func.func @transform_1(%arg0: i32) -> (i32, i32) {
    %c0_i32 = arith.constant 0 : i32
    %c0_i32_0 = arith.constant 0 : i32
    %c0_i32_1 = arith.constant 0 : i32
    return %c0_i32, %c0_i32_0 : i32, i32
  }
  func.func @transform_2(%arg0: i32) -> (i32, i32) {
    %c0_i32 = arith.constant 0 : i32
    %c0_i32_0 = arith.constant 0 : i32
    %c0_i32_1 = arith.constant 0 : i32
    return %c0_i32, %c0_i32_0 : i32, i32
  }
  func.func @transform_3(%arg0: i32) -> (i32, i32) {
    %c0_i32 = arith.constant 0 : i32
    %c0_i32_0 = arith.constant 0 : i32
    %c0_i32_1 = arith.constant 0 : i32
    return %c0_i32, %c0_i32_0 : i32, i32
  }
  func.func @transform_4(%arg0: i32) -> (i32, i32) {
    %c0_i32 = arith.constant 0 : i32
    %c0_i32_0 = arith.constant 0 : i32
    %c0_i32_1 = arith.constant 0 : i32
    return %c0_i32, %c0_i32_0 : i32, i32
  }
  func.func @transform_5(%arg0: i32) -> (i32, i32) {
    %c0_i32 = arith.constant 0 : i32
    %c0_i32_0 = arith.constant 0 : i32
    %c0_i32_1 = arith.constant 0 : i32
    return %c0_i32, %c0_i32_0 : i32, i32
  }
  func.func @transform_6(%arg0: i32) -> (i32, i32) {
    %c0_i32 = arith.constant 0 : i32
    %c0_i32_0 = arith.constant 0 : i32
    %c0_i32_1 = arith.constant 0 : i32
    return %c0_i32, %c0_i32_0 : i32, i32
  }
  func.func @transform_7(%arg0: i32) -> (i32, i32) {
    %c0_i32 = arith.constant 0 : i32
    %c0_i32_0 = arith.constant 0 : i32
    return %arg0, %c0_i32 : i32, i32
  }
}

</mosaic_0001>

<bundles_post_ra>
// kernel: tpu_custom_call.1
= control target key start
LH: loop header
LB: loop body
LE: loop exit
PB: predicated region body
PF: predicated region fallthrough
CT: control target
= control target key end

     0   :  { %12 = vsyncpa [#allocation3], 0  ;;  %s872_s24 = smov [#allocation2]   ;;  %s1083_s0 = inlined_call_operand.vmem [shape: f32[8,1000], index: 0, kind: input, shape index: {}]   ;;  %s1084_s1 = inlined_call_operand.hbm [shape: f32[1000,128], index: 1, kind: input, shape index: {}]   ;;  %s1085_s2 = inlined_call_operand.vmem [shape: f32[1,128], index: 2, kind: input, shape index: {}]   ;;  %s1086_s3 = inlined_call_operand.vmem [shape: f32[128,64], index: 3, kind: input, shape index: {}]   ;;  %s1087_s4 = inlined_call_operand.vmem [shape: f32[1,64], index: 4, kind: input, shape index: {}]   ;;  %s1088_s5 = inlined_call_operand.vmem [shape: f32[64,2], index: 5, kind: input, shape index: {}]   ;;  %s1089_s6 = inlined_call_operand.vmem [shape: f32[1,2], index: 6, kind: input, shape index: {}]   ;;  %s1090_s7 = inlined_call_operand.vmem [shape: f32[8,2], index: 7, kind: output, shape index: {}]  }
   0x1   :  { %s20_s25 = sshll.u32 %s872_s24, 4  ;;  %s21_s25 = int_to_ptr.vmem [resolvable:$true] %s20_s25 }
   0x2   :  { %s858_s26 = scalar_lea.vmem %s21_s25, 16000  ;;  %p863_p1 = scmp.lt.s32.totalorder %s21_s25, %s21_s25 }
   0x3   :  { %p859_p0 = scmp.ne.s32.totalorder %s21_s25, %s858_s26  ;;  %p864_p2 = scmp.lt.s32.totalorder %s858_s26, %s858_s26 }
   0x5   :  { %p865_p3 = por %p864_p2, %p863_p1 }
   0x7   :  { %p866_p4 = pnand %p865_p3, %p859_p0 }
   0x9   :  { %869 = shalt.err (!%p866_p4)
}
   0xa   :  { %s873_s27 = smov 128   ;;  %s874_s28 = smov 8  }
   0xb   :  { %26 = dma.hbm_to_vmem [thread:$0]  %s1084_s1, 16000, %s21_s25, [#allocation3], %s873_s27, %s873_s27, %s874_s28  }
   0xc   :  { %870 = dma.done.wait [#allocation3], 16000  }
   0xd   :  { %871 = vsyncadd [#allocation3], 4294951296  ;;  %v79_v0 = vld [vmem:[#allocation2 + $0xf8] sm:$0xff]  ;;  %v78_v4 = vld [vmem:[#allocation2 + $0xf0] sm:$0xff]  ;;  %vm180_vm0 = vcmask 850944   ;;  %vm876_vm1 = vmmov 0  }
   0xe   :  { %v111_v1 = vld [vmem:[#allocation2 + $0x1f8] sm:$0xff]  ;;  %660 = vmatprep.subr.mxu0 %v79_v0  ;;  %v110_v5 = vld [vmem:[#allocation2 + $0x1f0] sm:$0xff]  ;;  %v77_v8 = vld [vmem:[#allocation2 + $0xe8] sm:$0xff]  ;;  %vm574_vm2 = vcmask 523264   ;;  %vm648_vm3 = vcmask 15360  }
   0xf   :  { %v63_v2 = vld [vmem:[#allocation2 + $0x78] sm:$0xff]  ;;  %695 = vmatprep.subr.mxu1 %v111_v1  ;;  %v62_v6 = vld [vmem:[#allocation2 + $0x70] sm:$0xff]  ;;  %v109_v9 = vld [vmem:[#allocation2 + $0x1e8] sm:$0xff] }
  0x10   :  { %v95_v3 = vld [vmem:[#allocation2 + $0x178] sm:$0xff]  ;;  %661 = vmatpush3.msra.mxu0 %v63_v2  ;;  %v94_v7 = vld [vmem:[#allocation2 + $0x170] sm:$0xff]  ;;  %v61_v10 = vld [vmem:[#allocation2 + $0x68] sm:$0xff] }
  0x11   :  { %696 = vmatpush3.msra.mxu1 %v95_v3  ;;  %662 = vmatprep.subr.mxu0 %v78_v4  ;;  %v93_v11 = vld [vmem:[#allocation2 + $0x168] sm:$0xff]  ;;  %v76_v12 = vld [vmem:[#allocation2 + $0xe0] sm:$0xff]  ;;  %v75_v16 = vld [vmem:[#allocation2 + $0xd8] sm:$0xff] }
  0x12   :  { %697 = vmatprep.subr.mxu1 %v110_v5  ;;  %663 = vmatpush3.msra.mxu0 %v62_v6  ;;  %v108_v13 = vld [vmem:[#allocation2 + $0x1e0] sm:$0xff]  ;;  %v107_v17 = vld [vmem:[#allocation2 + $0x1d8] sm:$0xff]  ;;  %v74_v20 = vld [vmem:[#allocation2 + $0xd0] sm:$0xff] }
  0x13   :  { %698 = vmatpush3.msra.mxu1 %v94_v7  ;;  %664 = vmatprep.subr.mxu0 %v77_v8  ;;  %v60_v14 = vld [vmem:[#allocation2 + $0x60] sm:$0xff]  ;;  %v59_v18 = vld [vmem:[#allocation2 + $0x58] sm:$0xff]  ;;  %v106_v21 = vld [vmem:[#allocation2 + $0x1d0] sm:$0xff]  ;;  %v875_v8 = vmov 0.0  }
  0x14   :  { %699 = vmatprep.subr.mxu1 %v109_v9  ;;  %v92_v15 = vld [vmem:[#allocation2 + $0x160] sm:$0xff]  ;;  %665 = vmatpush3.msra.mxu0 %v61_v10  ;;  %v91_v19 = vld [vmem:[#allocation2 + $0x158] sm:$0xff]  ;;  %v58_v22 = vld [vmem:[#allocation2 + $0x50] sm:$0xff] }
  0x15   :  { %700 = vmatpush3.msra.mxu1 %v93_v11  ;;  %666 = vmatprep.subr.mxu0 %v76_v12  ;;  %v90_v23 = vld [vmem:[#allocation2 + $0x150] sm:$0xff]  ;;  %v73_v24 = vld [vmem:[#allocation2 + $0xc8] sm:$0xff]  ;;  %v72_v28 = vld [vmem:[#allocation2 + $0xc0] sm:$0xff] }
  0x16   :  { %701 = vmatprep.subr.mxu1 %v108_v13  ;;  %667 = vmatpush3.msra.mxu0 %v60_v14  ;;  %v105_v25 = vld [vmem:[#allocation2 + $0x1c8] sm:$0xff]  ;;  %v104_v29 = vld [vmem:[#allocation2 + $0x1c0] sm:$0xff]  ;;  %v71_v32 = vld [vmem:[#allocation2 + $0xb8] sm:$0xff] }
  0x17   :  { %702 = vmatpush3.msra.mxu1 %v92_v15  ;;  %668 = vmatprep.subr.mxu0 %v75_v16  ;;  %v57_v26 = vld [vmem:[#allocation2 + $0x48] sm:$0xff]  ;;  %v56_v30 = vld [vmem:[#allocation2 + $0x40] sm:$0xff]  ;;  %v103_v33 = vld [vmem:[#allocation2 + $0x1b8] sm:$0xff] }
  0x18   :  { %703 = vmatprep.subr.mxu1 %v107_v17  ;;  %669 = vmatpush3.msra.mxu0 %v59_v18  ;;  %v89_v27 = vld [vmem:[#allocation2 + $0x148] sm:$0xff]  ;;  %v88_v31 = vld [vmem:[#allocation2 + $0x140] sm:$0xff]  ;;  %v55_v34 = vld [vmem:[#allocation2 + $0x38] sm:$0xff] }
  0x19   :  { %704 = vmatpush3.msra.mxu1 %v91_v19  ;;  %670 = vmatprep.subr.mxu0 %v74_v20  ;;  %v87_v35 = vld [vmem:[#allocation2 + $0x138] sm:$0xff]  ;;  %v70_v36 = vld [vmem:[#allocation2 + $0xb0] sm:$0xff]  ;;  %v69_v40 = vld [vmem:[#allocation2 + $0xa8] sm:$0xff] }
  0x1a   :  { %705 = vmatprep.subr.mxu1 %v106_v21  ;;  %671 = vmatpush3.msra.mxu0 %v58_v22  ;;  %v102_v37 = vld [vmem:[#allocation2 + $0x1b0] sm:$0xff]  ;;  %v101_v41 = vld [vmem:[#allocation2 + $0x1a8] sm:$0xff]  ;;  %v68_v44 = vld [vmem:[#allocation2 + $0xa0] sm:$0xff] }
  0x1b   :  { %706 = vmatpush3.msra.mxu1 %v90_v23  ;;  %672 = vmatprep.subr.mxu0 %v73_v24  ;;  %v54_v38 = vld [vmem:[#allocation2 + $0x30] sm:$0xff]  ;;  %v53_v42 = vld [vmem:[#allocation2 + $0x28] sm:$0xff]  ;;  %v100_v45 = vld [vmem:[#allocation2 + $0x1a0] sm:$0xff] }
  0x1c   :  { %707 = vmatprep.subr.mxu1 %v105_v25  ;;  %673 = vmatpush3.msra.mxu0 %v57_v26  ;;  %v86_v39 = vld [vmem:[#allocation2 + $0x130] sm:$0xff]  ;;  %v85_v43 = vld [vmem:[#allocation2 + $0x128] sm:$0xff]  ;;  %v52_v46 = vld [vmem:[#allocation2 + $0x20] sm:$0xff] }
  0x1d   :  { %708 = vmatpush3.msra.mxu1 %v89_v27  ;;  %674 = vmatprep.subr.mxu0 %v72_v28  ;;  %v84_v47 = vld [vmem:[#allocation2 + $0x120] sm:$0xff]  ;;  %v67_v48 = vld [vmem:[#allocation2 + $0x98] sm:$0xff]  ;;  %v66_v52 = vld [vmem:[#allocation2 + $0x90] sm:$0xff] }
  0x1e   :  { %709 = vmatprep.subr.mxu1 %v104_v29  ;;  %675 = vmatpush3.msra.mxu0 %v56_v30  ;;  %v99_v49 = vld [vmem:[#allocation2 + $0x198] sm:$0xff]  ;;  %v98_v53 = vld [vmem:[#allocation2 + $0x190] sm:$0xff]  ;;  %v65_v56 = vld [vmem:[#allocation2 + $0x88] sm:$0xff] }
  0x1f   :  { %710 = vmatpush3.msra.mxu1 %v88_v31  ;;  %676 = vmatprep.subr.mxu0 %v71_v32  ;;  %v51_v50 = vld [vmem:[#allocation2 + $0x18] sm:$0xff]  ;;  %v50_v54 = vld [vmem:[#allocation2 + $0x10] sm:$0xff]  ;;  %v97_v57 = vld [vmem:[#allocation2 + $0x188] sm:$0xff] }
  0x20   :  { %711 = vmatprep.subr.mxu1 %v103_v33  ;;  %677 = vmatpush3.msra.mxu0 %v55_v34  ;;  %v83_v51 = vld [vmem:[#allocation2 + $0x118] sm:$0xff]  ;;  %v82_v55 = vld [vmem:[#allocation2 + $0x110] sm:$0xff]  ;;  %v49_v58 = vld [vmem:[#allocation2 + $0x8] sm:$0xff] }
  0x21   :  { %712 = vmatpush3.msra.mxu1 %v87_v35  ;;  %678 = vmatprep.subr.mxu0 %v70_v36  ;;  %v81_v59 = vld [vmem:[#allocation2 + $0x108] sm:$0xff]  ;;  %v64_v60 = vld [vmem:[#allocation2 + $0x80] sm:$0xff]  ;;  %v43_v1 = vld [vmem:[%s1083_s0 + $0x18] sm:$0xff] }
  0x22   :  { %713 = vmatprep.subr.mxu1 %v102_v37  ;;  %679 = vmatpush3.msra.mxu0 %v54_v38  ;;  %v96_v61 = vld [vmem:[#allocation2 + $0x180] sm:$0xff]  ;;  %v41_v63 = vld [vmem:[%s1083_s0 + $0x8] sm:$0xff]  ;;  %v42_v3 = vld [vmem:[%s1083_s0 + $0x10] sm:$0xff] }
  0x23   :  { %714 = vmatpush3.msra.mxu1 %v86_v39  ;;  %680 = vmatprep.subr.mxu0 %v69_v40  ;;  %v48_v62 = vld [vmem:[#allocation2] sm:$0xff]  ;;  %v143_v4 = vld [vmem:[#allocation2 + $0x2f8] sm:$0xff]  ;;  %v142_v7 = vld [vmem:[#allocation2 + $0x2f0] sm:$0xff] }
  0x24   :  { %715 = vmatprep.subr.mxu1 %v101_v41  ;;  %681 = vmatpush3.msra.mxu0 %v53_v42  ;;  %v80_v0 = vld [vmem:[#allocation2 + $0x100] sm:$0xff]  ;;  %v127_v5 = vld [vmem:[#allocation2 + $0x278] sm:$0xff]  ;;  %v126_v9 = vld [vmem:[#allocation2 + $0x270] sm:$0xff] }
  0x25   :  { %716 = vmatpush3.msra.mxu1 %v85_v43  ;;  %682 = vmatprep.subr.mxu0 %v68_v44  ;;  %v40_v2 = vld [vmem:[%s1083_s0] sm:$0xff]  ;;  %v159_v6 = vld [vmem:[#allocation2 + $0x378] sm:$0xff]  ;;  %v158_v10 = vld [vmem:[#allocation2 + $0x370] sm:$0xff] }
  0x26   :  { %717 = vmatprep.subr.mxu1 %v100_v45  ;;  %683 = vmatpush3.msra.mxu0 %v52_v46  ;;  %v141_v11 = vld [vmem:[#allocation2 + $0x2e8] sm:$0xff]  ;;  %v140_v14 = vld [vmem:[#allocation2 + $0x2e0] sm:$0xff]  ;;  %v139_v17 = vld [vmem:[#allocation2 + $0x2d8] sm:$0xff] }
  0x27   :  { %718 = vmatpush3.msra.mxu1 %v84_v47  ;;  %684 = vmatprep.subr.mxu0 %v67_v48  ;;  %v125_v12 = vld [vmem:[#allocation2 + $0x268] sm:$0xff]  ;;  %v124_v15 = vld [vmem:[#allocation2 + $0x260] sm:$0xff]  ;;  %v123_v18 = vld [vmem:[#allocation2 + $0x258] sm:$0xff] }
  0x28   :  { %719 = vmatprep.subr.mxu1 %v99_v49  ;;  %685 = vmatpush3.msra.mxu0 %v51_v50  ;;  %v157_v13 = vld [vmem:[#allocation2 + $0x368] sm:$0xff]  ;;  %v156_v16 = vld [vmem:[#allocation2 + $0x360] sm:$0xff]  ;;  %v155_v19 = vld [vmem:[#allocation2 + $0x358] sm:$0xff] }
  0x29   :  { %720 = vmatpush3.msra.mxu1 %v83_v51  ;;  %686 = vmatprep.subr.mxu0 %v66_v52  ;;  %v138_v20 = vld [vmem:[#allocation2 + $0x2d0] sm:$0xff]  ;;  %v137_v23 = vld [vmem:[#allocation2 + $0x2c8] sm:$0xff]  ;;  %v136_v26 = vld [vmem:[#allocation2 + $0x2c0] sm:$0xff] }
  0x2a   :  { %721 = vmatprep.subr.mxu1 %v98_v53  ;;  %687 = vmatpush3.msra.mxu0 %v50_v54  ;;  %v122_v21 = vld [vmem:[#allocation2 + $0x250] sm:$0xff]  ;;  %v121_v24 = vld [vmem:[#allocation2 + $0x248] sm:$0xff]  ;;  %v120_v27 = vld [vmem:[#allocation2 + $0x240] sm:$0xff] }
  0x2b   :  { %722 = vmatpush3.msra.mxu1 %v82_v55  ;;  %688 = vmatprep.subr.mxu0 %v65_v56  ;;  %v154_v22 = vld [vmem:[#allocation2 + $0x350] sm:$0xff]  ;;  %v153_v25 = vld [vmem:[#allocation2 + $0x348] sm:$0xff]  ;;  %v152_v28 = vld [vmem:[#allocation2 + $0x340] sm:$0xff] }
  0x2c   :  { %723 = vmatprep.subr.mxu1 %v97_v57  ;;  %689 = vmatpush3.msra.mxu0 %v49_v58  ;;  %v135_v29 = vld [vmem:[#allocation2 + $0x2b8] sm:$0xff]  ;;  %v134_v32 = vld [vmem:[#allocation2 + $0x2b0] sm:$0xff]  ;;  %v133_v35 = vld [vmem:[#allocation2 + $0x2a8] sm:$0xff] }
  0x2d   :  { %724 = vmatpush3.msra.mxu1 %v81_v59  ;;  %690 = vmatprep.subr.mxu0 %v64_v60  ;;  %v119_v30 = vld [vmem:[#allocation2 + $0x238] sm:$0xff]  ;;  %v118_v33 = vld [vmem:[#allocation2 + $0x230] sm:$0xff]  ;;  %v117_v36 = vld [vmem:[#allocation2 + $0x228] sm:$0xff] }
  0x2e   :  { %725 = vmatprep.subr.mxu1 %v96_v61  ;;  %691 = vmatpush3.msra.mxu0 %v48_v62  ;;  %v151_v31 = vld [vmem:[#allocation2 + $0x338] sm:$0xff]  ;;  %v150_v34 = vld [vmem:[#allocation2 + $0x330] sm:$0xff]  ;;  %v149_v37 = vld [vmem:[#allocation2 + $0x328] sm:$0xff] }
  0x2f   :  { %248 = vmatprep.mubr.f32.mxu0 %v41_v63  ;;  %726 = vmatpush3.msra.mxu1 %v80_v0  ;;  %v132_v38 = vld [vmem:[#allocation2 + $0x2a0] sm:$0xff]  ;;  %v131_v41 = vld [vmem:[#allocation2 + $0x298] sm:$0xff]  ;;  %v130_v44 = vld [vmem:[#allocation2 + $0x290] sm:$0xff] }
  0x30   :  { %318 = vmatprep.mubr.f32.mxu1 %v43_v1  ;;  %249 = vmatmul.mubr.f32.vlgmr.msra.gmra.mxu0 %v40_v2  ;;  %v116_v39 = vld [vmem:[#allocation2 + $0x220] sm:$0xff]  ;;  %v115_v42 = vld [vmem:[#allocation2 + $0x218] sm:$0xff]  ;;  %v114_v45 = vld [vmem:[#allocation2 + $0x210] sm:$0xff] }
  0x31   :  { %319 = vmatmul.mubr.f32.vlgmr.msra.gmra.mxu1 %v42_v3  ;;  %730 = vmatprep.subr.mxu0 %v143_v4  ;;  %v148_v40 = vld [vmem:[#allocation2 + $0x320] sm:$0xff]  ;;  %v147_v43 = vld [vmem:[#allocation2 + $0x318] sm:$0xff]  ;;  %v146_v46 = vld [vmem:[#allocation2 + $0x310] sm:$0xff] }
  0x32   :  { %394 = vmatprep.subr.mxu1 %v875_v8  ;;  %731 = vmatpush3.msra.mxu0 %v127_v5  ;;  %v129_v47 = vld [vmem:[#allocation2 + $0x288] sm:$0xff]  ;;  %v128_v50 = vld [vmem:[#allocation2 + $0x280] sm:$0xff]  ;;  %v47_v55 = vld [vmem:[%s1083_s0 + $0x38] sm:$0xff] }
  0x33   :  { %395 = vmatpush1.msra.mxu1 %v159_v6  ;;  %732 = vmatprep.subr.mxu0 %v142_v7  ;;  %v113_v48 = vld [vmem:[#allocation2 + $0x208] sm:$0xff]  ;;  %v112_v51 = vld [vmem:[#allocation2 + $0x200] sm:$0xff]  ;;  %v171_v57 = vld [vmem:[#allocation2 + $0x3d8] sm:$0xff] }
  0x34   :  { %396 = vmatprep.subr.mxu1 %v875_v8  ;;  %733 = vmatpush3.msra.mxu0 %v126_v9  ;;  %v145_v49 = vld [vmem:[#allocation2 + $0x308] sm:$0xff]  ;;  %v144_v53 = vld [vmem:[#allocation2 + $0x300] sm:$0xff]  ;;  %v170_v58 = vld [vmem:[#allocation2 + $0x3d0] sm:$0xff] }
  0x35   :  { %397 = vmatpush1.msra.mxu1 %v158_v10  ;;  %734 = vmatprep.subr.mxu0 %v141_v11  ;;  %v45_v52 = vld [vmem:[%s1083_s0 + $0x28] sm:$0xff]  ;;  %v44_v54 = vld [vmem:[%s1083_s0 + $0x20] sm:$0xff]  ;;  %v167_v61 = vld [vmem:[#allocation2 + $0x3b8] sm:$0xff] }
  0x36   :  { %398 = vmatprep.subr.mxu1 %v875_v8  ;;  %735 = vmatpush3.msra.mxu0 %v125_v12  ;;  %v172_v56 = vld [vmem:[#allocation2 + $0x3e0] sm:$0xff]  ;;  %v169_v59 = vld [vmem:[#allocation2 + $0x3c8] sm:$0xff]  ;;  %v166_v62 = vld [vmem:[#allocation2 + $0x3b0] sm:$0xff] }
  0x37   :  { %399 = vmatpush1.msra.mxu1 %v157_v13  ;;  %736 = vmatprep.subr.mxu0 %v140_v14  ;;  %v168_v60 = vld [vmem:[#allocation2 + $0x3c0] sm:$0xff]  ;;  %v165_v63 = vld [vmem:[#allocation2 + $0x3a8] sm:$0xff]  ;;  %v163_v1 = vld [vmem:[#allocation2 + $0x398] sm:$0xff] }
  0x38   :  { %400 = vmatprep.subr.mxu1 %v875_v8  ;;  %737 = vmatpush3.msra.mxu0 %v124_v15  ;;  %v164_v0 = vld [vmem:[#allocation2 + $0x3a0] sm:$0xff]  ;;  %v162_v2 = vld [vmem:[#allocation2 + $0x390] sm:$0xff]  ;;  %v161_v3 = vld [vmem:[#allocation2 + $0x388] sm:$0xff] }
  0x39   :  { %401 = vmatpush1.msra.mxu1 %v156_v16  ;;  %738 = vmatprep.subr.mxu0 %v139_v17  ;;  %v160_v4 = vld [vmem:[#allocation2 + $0x380] sm:$0xff]  ;;  %v46_v5 = vld [vmem:[%s1083_s0 + $0x30] sm:$0xff]  ;;  %v480_v6 = vld [vmem:[%s1086_s3 + $0x78] sm:$0xff] }
  0x3a   :  { %402 = vmatprep.subr.mxu1 %v875_v8  ;;  %739 = vmatpush3.msra.mxu0 %v123_v18  ;;  %v479_v7 = vld [vmem:[%s1086_s3 + $0x70] sm:$0xff]  ;;  %v478_v9 = vld [vmem:[%s1086_s3 + $0x68] sm:$0xff]  ;;  %v477_v10 = vld [vmem:[%s1086_s3 + $0x60] sm:$0xff] }
  0x3b   :  { %403 = vmatpush1.msra.mxu1 %v155_v19  ;;  %740 = vmatprep.subr.mxu0 %v138_v20  ;;  %v476_v11 = vld [vmem:[%s1086_s3 + $0x58] sm:$0xff]  ;;  %v475_v12 = vld [vmem:[%s1086_s3 + $0x50] sm:$0xff]  ;;  %v474_v13 = vld [vmem:[%s1086_s3 + $0x48] sm:$0xff] }
  0x3c   :  { %404 = vmatprep.subr.mxu1 %v875_v8  ;;  %741 = vmatpush3.msra.mxu0 %v122_v21  ;;  %v473_v14 = vld [vmem:[%s1086_s3 + $0x40] sm:$0xff]  ;;  %v472_v15 = vld [vmem:[%s1086_s3 + $0x38] sm:$0xff]  ;;  %v471_v16 = vld [vmem:[%s1086_s3 + $0x30] sm:$0xff] }
  0x3d   :  { %405 = vmatpush1.msra.mxu1 %v154_v22  ;;  %742 = vmatprep.subr.mxu0 %v137_v23  ;;  %v470_v17 = vld [vmem:[%s1086_s3 + $0x28] sm:$0xff]  ;;  %v469_v18 = vld [vmem:[%s1086_s3 + $0x20] sm:$0xff]  ;;  %v468_v19 = vld [vmem:[%s1086_s3 + $0x18] sm:$0xff] }
  0x3e   :  { %406 = vmatprep.subr.mxu1 %v875_v8  ;;  %743 = vmatpush3.msra.mxu0 %v121_v24  ;;  %v467_v20 = vld [vmem:[%s1086_s3 + $0x10] sm:$0xff]  ;;  %v466_v21 = vld [vmem:[%s1086_s3 + $0x8] sm:$0xff]  ;;  %v465_v22 = vld [vmem:[%s1086_s3] sm:$0xff] }
  0x3f   :  { %407 = vmatpush1.msra.mxu1 %v153_v25  ;;  %744 = vmatprep.subr.mxu0 %v136_v26  ;;  %v566_v23 = vld [vmem:[%s1088_s5 + $0x38] sm:$0xff]  ;;  %v565_v24 = vld [vmem:[%s1088_s5 + $0x30] sm:$0xff]  ;;  %v564_v25 = vld [vmem:[%s1088_s5 + $0x28] sm:$0xff] }
  0x40   :  { %408 = vmatprep.subr.mxu1 %v875_v8  ;;  %745 = vmatpush3.msra.mxu0 %v120_v27  ;;  %v563_v26 = vld [vmem:[%s1088_s5 + $0x20] sm:$0xff]  ;;  %v562_v27 = vld [vmem:[%s1088_s5 + $0x18] sm:$0xff] }
  0x41   :  { %409 = vmatpush1.msra.mxu1 %v152_v28  ;;  %746 = vmatprep.subr.mxu0 %v135_v29 }
  0x42   :  { %410 = vmatprep.subr.mxu1 %v875_v8  ;;  %747 = vmatpush3.msra.mxu0 %v119_v30 }
  0x43   :  { %411 = vmatpush1.msra.mxu1 %v151_v31  ;;  %748 = vmatprep.subr.mxu0 %v134_v32 }
  0x44   :  { %412 = vmatprep.subr.mxu1 %v875_v8  ;;  %749 = vmatpush3.msra.mxu0 %v118_v33  ;;  %v655_v33 = vld [vmem:[%s1085_s2] ss:$0 sm:$0xff] }
  0x45   :  { %413 = vmatpush1.msra.mxu1 %v150_v34  ;;  %750 = vmatprep.subr.mxu0 %v133_v35 }
  0x46   :  { %414 = vmatprep.subr.mxu1 %v875_v8  ;;  %751 = vmatpush3.msra.mxu0 %v117_v36 }
  0x47   :  { %415 = vmatpush1.msra.mxu1 %v149_v37  ;;  %752 = vmatprep.subr.mxu0 %v132_v38 }
  0x48   :  { %416 = vmatprep.subr.mxu1 %v875_v8  ;;  %753 = vmatpush3.msra.mxu0 %v116_v39 }
  0x49   :  { %417 = vmatpush1.msra.mxu1 %v148_v40  ;;  %754 = vmatprep.subr.mxu0 %v131_v41 }
  0x4a   :  { %418 = vmatprep.subr.mxu1 %v875_v8  ;;  %755 = vmatpush3.msra.mxu0 %v115_v42 }
  0x4b   :  { %419 = vmatpush1.msra.mxu1 %v147_v43  ;;  %756 = vmatprep.subr.mxu0 %v130_v44 }
  0x4c   :  { %420 = vmatprep.subr.mxu1 %v875_v8  ;;  %757 = vmatpush3.msra.mxu0 %v114_v45  ;;  %v561_v45 = vld [vmem:[%s1088_s5 + $0x10] sm:$0xff] }
  0x4d   :  { %421 = vmatpush1.msra.mxu1 %v146_v46  ;;  %758 = vmatprep.subr.mxu0 %v129_v47  ;;  %v560_v46 = vld [vmem:[%s1088_s5 + $0x8] sm:$0xff]  ;;  %v559_v47 = vld [vmem:[%s1088_s5] sm:$0xff] }
  0x4e   :  { %422 = vmatprep.subr.mxu1 %v875_v8  ;;  %759 = vmatpush3.msra.mxu0 %v113_v48  ;;  %v657_v48 = vld [vmem:[%s1087_s4] ss:$0 sm:$0xff] }
  0x4f   :  { %423 = vmatpush1.msra.mxu1 %v145_v49  ;;  %760 = vmatprep.subr.mxu0 %v128_v50 }
  0x50   :  { %424 = vmatprep.subr.mxu1 %v875_v8  ;;  %761 = vmatpush3.msra.mxu0 %v112_v51 }
  0x51   :  { %388 = vmatprep.mubr.f32.mxu0 %v45_v52  ;;  %425 = vmatpush1.msra.mxu1 %v144_v53  ;;  %v658_v53 = vld [vmem:[%s1089_s6] ss:$0 sm:$0xff] }
  0x52   :  { %389 = vmatmul.mubr.f32.vlgmr.msra.gmra.mxu0 %v44_v54  ;;  %432 = vmatprep.subr.mxu1 %v875_v8 }
  0x53   :  { %656 = vmatprep.mubr.msk.f32.mxu1 %vm180_vm0, %v47_v55  ;;  %433 = vmatpush2.msra.mxu1 %v172_v56 }
  0x54   :  { %791 = vmatprep.subr.mxu0 %v875_v8  ;;  %434 = vmatprep.subr.mxu1 %v875_v8 }
  0x55   :  { %435 = vmatpush2.msra.mxu1 %v171_v57  ;;  %792 = vmatpush3.msra.mxu0 %v480_v6 }
  0x56   :  { %436 = vmatprep.subr.mxu1 %v875_v8  ;;  %793 = vmatprep.subr.mxu0 %v875_v8 }
  0x57   :  { %437 = vmatpush2.msra.mxu1 %v170_v58  ;;  %794 = vmatpush3.msra.mxu0 %v479_v7 }
  0x58   :  { %438 = vmatprep.subr.mxu1 %v875_v8  ;;  %795 = vmatprep.subr.mxu0 %v875_v8 }
  0x59   :  { %439 = vmatpush2.msra.mxu1 %v169_v59  ;;  %796 = vmatpush3.msra.mxu0 %v478_v9 }
  0x5a   :  { %440 = vmatprep.subr.mxu1 %v875_v8  ;;  %797 = vmatprep.subr.mxu0 %v875_v8 }
  0x5b   :  { %441 = vmatpush2.msra.mxu1 %v168_v60  ;;  %798 = vmatpush3.msra.mxu0 %v477_v10 }
  0x5c   :  { %442 = vmatprep.subr.mxu1 %v875_v8  ;;  %799 = vmatprep.subr.mxu0 %v875_v8 }
  0x5d   :  { %443 = vmatpush2.msra.mxu1 %v167_v61  ;;  %800 = vmatpush3.msra.mxu0 %v476_v11 }
  0x5e   :  { %444 = vmatprep.subr.mxu1 %v875_v8  ;;  %801 = vmatprep.subr.mxu0 %v875_v8 }
  0x5f   :  { %445 = vmatpush2.msra.mxu1 %v166_v62  ;;  %802 = vmatpush3.msra.mxu0 %v475_v12 }
  0x60   :  { %446 = vmatprep.subr.mxu1 %v875_v8  ;;  %803 = vmatprep.subr.mxu0 %v875_v8 }
  0x61   :  { %447 = vmatpush2.msra.mxu1 %v165_v63  ;;  %804 = vmatpush3.msra.mxu0 %v474_v13 }
  0x62   :  { %448 = vmatprep.subr.mxu1 %v875_v8  ;;  %805 = vmatprep.subr.mxu0 %v875_v8 }
  0x63   :  { %449 = vmatpush2.msra.mxu1 %v164_v0  ;;  %806 = vmatpush3.msra.mxu0 %v473_v14 }
  0x64   :  { %450 = vmatprep.subr.mxu1 %v875_v8  ;;  %807 = vmatprep.subr.mxu0 %v875_v8 }
  0x65   :  { %451 = vmatpush2.msra.mxu1 %v163_v1  ;;  %808 = vmatpush3.msra.mxu0 %v472_v15 }
  0x66   :  { %452 = vmatprep.subr.mxu1 %v875_v8  ;;  %809 = vmatprep.subr.mxu0 %v875_v8 }
  0x67   :  { %453 = vmatpush2.msra.mxu1 %v162_v2  ;;  %810 = vmatpush3.msra.mxu0 %v471_v16 }
  0x68   :  { %454 = vmatprep.subr.mxu1 %v875_v8  ;;  %811 = vmatprep.subr.mxu0 %v875_v8 }
  0x69   :  { %455 = vmatpush2.msra.mxu1 %v161_v3  ;;  %812 = vmatpush3.msra.mxu0 %v470_v17 }
  0x6a   :  { %456 = vmatprep.subr.mxu1 %v875_v8  ;;  %813 = vmatprep.subr.mxu0 %v875_v8 }
  0x6b   :  { %457 = vmatpush2.msra.mxu1 %v160_v4  ;;  %814 = vmatpush3.msra.mxu0 %v469_v18 }
  0x6c   :  { %459 = vmatmul.mubr.f32.vlgmr.msra.gmra.mxu1 %v46_v5  ;;  %826 = vmatprep.subr.mxu1 %v875_v8 }
  0x6d   :  { %815 = vmatprep.subr.mxu0 %v875_v8  ;;  %823 = vmatprep.mubr.msk.f32.mxu0 %vm876_vm1, %v875_v8 }
  0x6e   :  { %816 = vmatpush3.msra.mxu0 %v468_v19  ;;  %842 = vmatprep.mubr.msk.f32.mxu1 %vm876_vm1, %v875_v8 }
  0x6f   :  { %817 = vmatprep.subr.mxu0 %v875_v8  ;;  %827 = vmatpush3.msra.mxu1 %v566_v23 }
  0x70   :  { %818 = vmatpush3.msra.mxu0 %v467_v20  ;;  %828 = vmatprep.subr.mxu1 %v875_v8 }
  0x71   :  { %819 = vmatprep.subr.mxu0 %v875_v8  ;;  %829 = vmatpush3.msra.mxu1 %v565_v24 }
  0x72   :  { %820 = vmatpush3.msra.mxu0 %v466_v21  ;;  %830 = vmatprep.subr.mxu1 %v875_v8 }
  0x73   :  { %821 = vmatprep.subr.mxu0 %v875_v8  ;;  %831 = vmatpush3.msra.mxu1 %v564_v25 }
  0x74   :  { %822 = vmatpush3.msra.mxu0 %v465_v22  ;;  %832 = vmatprep.subr.mxu1 %v875_v8 }
  0x75   :  { %833 = vmatpush3.msra.mxu1 %v563_v26 }
  0x76   :  { %834 = vmatprep.subr.mxu1 %v875_v8 }
  0x77   :  { %835 = vmatpush3.msra.mxu1 %v562_v27 }
  0x78   :  { %836 = vmatprep.subr.mxu1 %v875_v8 }
  0x79   :  { %837 = vmatpush3.msra.mxu1 %v561_v45 }
  0x7a   :  { %838 = vmatprep.subr.mxu1 %v875_v8 }
  0x7b   :  { %839 = vmatpush3.msra.mxu1 %v560_v46 }
  0x7c   :  { %840 = vmatprep.subr.mxu1 %v875_v8 }
  0x7d   :  { %841 = vmatpush3.msra.mxu1 %v559_v47 }
  0xf0   :  { %v692_v28 = vpop.f32.mrf.mxu0 }
  0xf1   :  { %v727_v30 = vpop.f32.mrf.mxu1 }
  0xf2   :  { %v693_v29 = vpop.f32.mrf.mxu0 }
  0xf3   :  { %v694_v32 = vadd.f32 %v693_v29, %v692_v28  ;;  %v728_v34 = vpop.f32.mrf.mxu1 }
  0xf4   :  { %v729_v37 = vadd.f32 %v728_v34, %v727_v30 }
  0xf5   :  { %v251_v36 = vadd.f32 %v694_v32, %v655_v33 }
  0xf7   :  { %v321_v39 = vadd.f32 %v729_v37, %v251_v36 }
 0x112   :  { %v762_v31 = vpop.f32.mrf.mxu0 }
 0x114   :  { %v763_v35 = vpop.f32.mrf.mxu0 }
 0x115   :  { %v764_v38 = vadd.f32 %v763_v35, %v762_v31 }
 0x117   :  { %v391_v40 = vadd.f32 %v764_v38, %v321_v39 }
 0x12c   :  { %v460_v41 = vpop.f32.mrf.mxu1 }
 0x12d   :  { %v461_v42 = vadd.f32 %v460_v41, %v391_v40 }
 0x12e   :  { %v462_v43 = vpop.f32.mrf.mxu1 }
 0x12f   :  { %v464_v44 = vmax.f32 %v461_v42, 0.0 }
 0x131   :  { %824 = vmatmul.mubr.f32.vlgmr.msra.gmra.mxu0 %v464_v44 }
 0x1f1   :  { %v554_v49 = vpop.f32.mrf.mxu0 }
 0x1f2   :  { %v555_v50 = vadd.f32 %v657_v48, %v554_v49 }
 0x1f3   :  { %v825_v51 = vpop.f32.mrf.mxu0 }
 0x1f4   :  { %v558_v52 = vmax.f32 %v555_v50, 0.0 }
 0x1f6   :  { %843 = vmatmul.mubr.msk.f32.vlgmr.msra.gmra.mxu1 %vm574_vm2, %v558_v52 }
 0x2b6   :  { %v644_v8 = vpop.f32.mrf.mxu1 }
 0x2b7   :  { %v645_v54 = vadd.f32 %v658_v53, %v644_v8 }
 0x2b8   :  { %v844_v55 = vpop.f32.mrf.mxu1 }
 0x2b9   :  { %649 = vst.msk [vmem:[%s1090_s7] sm:$0xff] %vm648_vm3, %v645_v54 }
 0x2ba   :  { %654 = vsyncpa [#allocation3], 1 }

</bundles_post_ra>
